<compile_context>
chip_gen: v6e
topology: v6e:2x2x1
jax: 0.10.0
libtpu: 0.0.40
codegen_flags: <defaults>
</compile_context>

<pallas_src>
import functools

import jax
import jax.numpy as jnp
from jax.experimental import pallas as pl
from jax.experimental.pallas import tpu as pltpu


def _round_up(a, m):
    return (a + m - 1) // m * m


def _vmem_caps():
    """Generation-aware VMEM working-set budget and scoped limit (bytes)."""
    try:
        cap = int(pltpu.get_tpu_info().vmem_capacity_bytes)
    except Exception:
        cap = 64 * 1024 * 1024  # conservative fallback (v7x per-TC size)
    limit = min(int(cap * 0.75), 112 * 1024 * 1024)   # headroom for Mosaic
    budget = min(int(cap * 0.40), 64 * 1024 * 1024)   # double-buffered tiles
    return budget, limit


_VMEM_BUDGET, _VMEM_LIMIT = _vmem_caps()


def _sublane_granularity(dtype):
    # f32 -> 8, bf16 -> 16, int8/fp8 -> 32 (packed sublanes).
    return max(8, 8 * 4 // jnp.dtype(dtype).itemsize)


# ----------------------- fused LayerNorm + Linear kernel ---------------------

def _fused_prenorm_linear_kernel(x_ref, g_ref, b_ref, w_ref, bias_ref,
                                 o_ref, xn_ref, *, eps):
    # Grid: (row tiles i ["parallel"], N tiles j ["arbitrary", innermost]).
    # The normalized row tile is computed once per i (at j == 0) into a VMEM
    # scratch in the INPUT dtype and reused for every N tile.
    # NOTE: this relies on j being the innermost sequentially-iterated
    # ("arbitrary") axis; do not reorder the grid or mark j "parallel".
    j = pl.program_id(1)

    @pl.when(j == 0)
    def _():
        x = x_ref[...].astype(jnp.float32)                        # (TM, D)
        mean = jnp.mean(x, axis=-1, keepdims=True)
        centered = x - mean
        var = jnp.mean(centered * centered, axis=-1, keepdims=True)
        inv = jax.lax.rsqrt(var + eps)
        g = g_ref[...].astype(jnp.float32)                        # (1, D)
        b = b_ref[...].astype(jnp.float32)                        # (1, D)
        xn_ref[...] = (centered * inv * g + b).astype(xn_ref.dtype)

    # MXU in the input dtype (bf16 path stays bf16); accumulate in f32.
    acc = jnp.dot(xn_ref[...], w_ref[...],                        # (TM, TN)
                  preferred_element_type=jnp.float32)
    o_ref[...] = (acc + bias_ref[...].astype(jnp.float32)).astype(o_ref.dtype)


def prenorm_linear_pallas(x, gamma, beta, w, bias, *, eps=1e-5):
    """Fused PreNorm fast path: Linear(LayerNorm(x)) in a single pallas_call."""
    orig_shape = x.shape
    D = orig_shape[-1]
    Dout = w.shape[1]
    x2 = x.reshape(-1, D)
    R = x2.shape[0]

    x_item = jnp.dtype(x.dtype).itemsize
    w_item = jnp.dtype(w.dtype).itemsize
    sub = _sublane_granularity(x.dtype)

    # ---- N tiling: lane-dense (multiple of 128); TN divides Dout_p by
    # construction.  If the (double-buffered) padded weight fits, keep it
    # resident (TN = full padded Dout, constant block index -> DMA'd once and
    # reused for every row tile).  Otherwise tile N and pad Dout to TN.
    Dout_128 = _round_up(Dout, 128)
    if 2 * D * Dout_128 * w_item <= _VMEM_BUDGET // 2:
        TN = Dout_128
    else:
        TN = 512
        while TN > 128 and 2 * D * TN * w_item > _VMEM_BUDGET // 2:
            TN //= 2
    Dout_p = _round_up(Dout, TN)

    # TODO(synk): in a real model, pre-pad the weight/bias once at init time;
    # this per-call pad only triggers when Dout % TN != 0.
    if Dout_p != Dout:
        w = jnp.pad(w, ((0, 0), (0, Dout_p - Dout)))
        bias = jnp.pad(bias, ((0, Dout_p - Dout),))

    # ---- Row tiling: largest dtype-granular tile whose working set
    # (real itemsizes, double-buffered) fits the budget.
    row_tile = sub
    for cand in (1024, 512, 256, 128, 64, 32, 16, 8):
        if cand < sub:
            continue
        need = (2 * cand * D * x_item          # x tile (double-buffered)
                + 2 * cand * TN * x_item       # out tile (double-buffered)
                + 2 * D * TN * w_item          # weight tile (double-buffered)
                + cand * D * x_item            # normalized scratch (x.dtype)
                + 4 * D * 4 + 2 * TN * 4)      # gamma/beta/bias
        if need <= _VMEM_BUDGET:
            row_tile = cand
            break
    # Keep >= 2 row tiles when R allows so both v7x TensorCores are used.
    if R >= 2 * sub:
        row_tile = min(row_tile, _round_up((R + 1) // 2, sub))
    else:
        row_tile = min(row_tile, _round_up(R, sub))

    R_p = _round_up(R, row_tile)
    if R_p != R:
        # TODO(synk): replace with a masked store on the ragged last row tile
        # to avoid this HBM copy for large, non-multiple R.
        x2 = jnp.pad(x2, ((0, R_p - R), (0, 0)))

    gamma2 = gamma.reshape(1, D)
    beta2 = beta.reshape(1, D)
    bias2 = bias.reshape(1, Dout_p)

    grid = (R_p // row_tile, Dout_p // TN)

    out = pl.pallas_call(
        functools.partial(_fused_prenorm_linear_kernel, eps=eps),
        out_shape=jax.ShapeDtypeStruct((R_p, Dout_p), x.dtype),
        grid_spec=pltpu.PrefetchScalarGridSpec(
            num_scalar_prefetch=0,
            grid=grid,
            in_specs=[
                pl.BlockSpec((row_tile, D), lambda i, j: (i, 0)),   # x
                pl.BlockSpec((1, D), lambda i, j: (0, 0)),          # gamma
                pl.BlockSpec((1, D), lambda i, j: (0, 0)),          # beta
                pl.BlockSpec((D, TN), lambda i, j: (0, j)),         # w
                pl.BlockSpec((1, TN), lambda i, j: (0, j)),         # bias
            ],
            out_specs=pl.BlockSpec((row_tile, TN), lambda i, j: (i, j)),
            scratch_shapes=[pltpu.VMEM((row_tile, D), x.dtype)],
        ),
        compiler_params=pltpu.CompilerParams(
            dimension_semantics=("parallel", "arbitrary"),
            vmem_limit_bytes=_VMEM_LIMIT,
        ),
    )(x2, gamma2, beta2, w, bias2)

    out = out[:R, :Dout]
    return out.reshape(orig_shape[:-1] + (Dout,))


# ----------------------------- LayerNorm kernel ------------------------------
# (standalone, for the generic PreNorm path where fn is an arbitrary callable)

def _layernorm_kernel(x_ref, gamma_ref, beta_ref, o_ref, *, eps):
    x = x_ref[...].astype(jnp.float32)                       # (TM, D)
    mean = jnp.mean(x, axis=-1, keepdims=True)
    centered = x - mean
    var = jnp.mean(centered * centered, axis=-1, keepdims=True)
    inv = jax.lax.rsqrt(var + eps)
    g = gamma_ref[...].astype(jnp.float32)                   # (1, D)
    b = beta_ref[...].astype(jnp.float32)                    # (1, D)
    o_ref[...] = (centered * inv * g + b).astype(o_ref.dtype)


def layernorm_pallas(x, gamma, beta, *, eps=1e-5):
    """x: (..., D) -> LayerNorm over last axis, affine with gamma/beta."""
    orig_shape = x.shape
    D = orig_shape[-1]
    x2 = x.reshape(-1, D)
    R = x2.shape[0]
    x_item = jnp.dtype(x.dtype).itemsize
    sub = _sublane_granularity(x.dtype)

    row_tile = sub
    for cand in (2048, 1024, 512, 256, 128, 64, 32, 16, 8):
        if cand < sub:
            continue
        # in + out tiles, double-buffered, in their real dtype (+ gamma/beta)
        if 4 * cand * D * x_item + 2 * D * 4 <= _VMEM_BUDGET:
            row_tile = cand
            break
    if R >= 2 * sub:
        row_tile = min(row_tile, _round_up((R + 1) // 2, sub))
    else:
        row_tile = min(row_tile, _round_up(R, sub))

    R_p = _round_up(R, row_tile)
    if R_p != R:
        x2 = jnp.pad(x2, ((0, R_p - R), (0, 0)))

    gamma2 = gamma.reshape(1, D)
    beta2 = beta.reshape(1, D)

    out = pl.pallas_call(
        functools.partial(_layernorm_kernel, eps=eps),
        out_shape=jax.ShapeDtypeStruct((R_p, D), x.dtype),
        grid_spec=pltpu.PrefetchScalarGridSpec(
            num_scalar_prefetch=0,
            grid=(R_p // row_tile,),
            in_specs=[
                pl.BlockSpec((row_tile, D), lambda i: (i, 0)),
                pl.BlockSpec((1, D), lambda i: (0, 0)),
                pl.BlockSpec((1, D), lambda i: (0, 0)),
            ],
            out_specs=pl.BlockSpec((row_tile, D), lambda i: (i, 0)),
        ),
        compiler_params=pltpu.CompilerParams(
            dimension_semantics=("parallel",),
            vmem_limit_bytes=_VMEM_LIMIT,
        ),
    )(x2, gamma2, beta2)
    return out[:R].reshape(orig_shape)


# ------------------------------- PreNorm -------------------------------------

def prenorm(x, gamma, beta, fn, **kwargs):
    """Equivalent of PreNorm.forward for an arbitrary fn: fn(LayerNorm(x))."""
    return fn(layernorm_pallas(x, gamma, beta), **kwargs)


# ------------------------------ reference ------------------------------------

def _layernorm_ref(x, gamma, beta, eps=1e-5):
    xf = x.astype(jnp.float32)
    mean = jnp.mean(xf, axis=-1, keepdims=True)
    var = jnp.mean((xf - mean) ** 2, axis=-1, keepdims=True)
    y = (xf - mean) * jax.lax.rsqrt(var + eps) * gamma.astype(jnp.float32) \
        + beta.astype(jnp.float32)
    return y


if __name__ == "__main__":
    key = jax.random.PRNGKey(0)
    k_x, k_w, k_b = jax.random.split(key, 3)

    batch, seq, dim = 2, 8, 32
    x = jax.random.normal(k_x, (batch, seq, dim), dtype=jnp.float32)

    # nn.LayerNorm(dim) init: weight = 1, bias = 0
    gamma = jnp.ones((dim,), jnp.float32)
    beta = jnp.zeros((dim,), jnp.float32)

    # example `fn`: Linear(dim, dim)
    w = jax.random.normal(k_w, (dim, dim), dtype=jnp.float32) * 0.02
    b = jax.random.normal(k_b, (dim,), dtype=jnp.float32) * 0.02

    # --- fused fast path: LayerNorm + Linear in one pallas_call (f32)
    out = prenorm_linear_pallas(x, gamma, beta, w, b)
    out = jax.block_until_ready(out)

    ref_norm = _layernorm_ref(x, gamma, beta)
    ref = ref_norm @ w + b
    assert out.shape == ref.shape
    assert jnp.allclose(out, ref.astype(out.dtype), atol=1e-4, rtol=1e-4), \
        "fused f32 mismatch"

    # --- fused fast path in bf16 (exercises the bf16 MXU feed path)
    out_bf = prenorm_linear_pallas(x.astype(jnp.bfloat16),
                                   gamma.astype(jnp.bfloat16),
                                   beta.astype(jnp.bfloat16),
                                   w.astype(jnp.bfloat16),
                                   b.astype(jnp.bfloat16))
    out_bf = jax.block_until_ready(out_bf)
    assert out_bf.dtype == jnp.bfloat16 and out_bf.shape == ref.shape
    assert jnp.allclose(out_bf.astype(jnp.float32), ref, atol=3e-2, rtol=3e-2), \
        "fused bf16 mismatch"

    # --- generic path: LayerNorm Pallas kernel + arbitrary fn composed on top
    out2 = prenorm(x, gamma, beta, lambda y: y * 2.0 + 1.0)
    out2 = jax.block_until_ready(out2)
    assert jnp.allclose(out2, (ref_norm * 2.0 + 1.0).astype(out2.dtype),
                        atol=1e-4, rtol=1e-4), "generic mismatch"

    print("KERNEL_OK")
</pallas_src>

<mosaic_0001>
module attributes {stable_mosaic.version = 11 : i64} {
  func.func @_fused_prenorm_linear_kernel(%arg0: i32, %arg1: i32, %arg2: memref<8x32xf32, #tpu.memory_space<vmem>>, %arg3: memref<1x32xf32, #tpu.memory_space<vmem>>, %arg4: memref<1x32xf32, #tpu.memory_space<vmem>>, %arg5: memref<32x128xf32, #tpu.memory_space<vmem>>, %arg6: memref<1x128xf32, #tpu.memory_space<vmem>>, %arg7: memref<8x128xf32, #tpu.memory_space<vmem>>, %arg8: memref<8x32xf32, #tpu.memory_space<vmem>>) attributes {dimension_semantics = [#tpu.dimension_semantics<parallel>, #tpu.dimension_semantics<arbitrary>], iteration_bounds = array<i64: 2, 1>, scalar_prefetch = 0 : i64, scratch_operands = 1 : i64, tpu.core_type = #tpu.core_type<tc>, window_params = [{transform_indices = @transform_0, window_bounds = array<i64: 8, 32>}, {pipeline_mode = #tpu.pipeline_mode<synchronous>, transform_indices = @transform_1, window_bounds = array<i64: 1, 32>}, {pipeline_mode = #tpu.pipeline_mode<synchronous>, transform_indices = @transform_2, window_bounds = array<i64: 1, 32>}, {transform_indices = @transform_3, window_bounds = array<i64: 32, 128>}, {transform_indices = @transform_4, window_bounds = array<i64: 1, 128>}, {transform_indices = @transform_5, window_bounds = array<i64: 8, 128>}]} {
    %c0_i32 = arith.constant 0 : i32
    %0 = arith.cmpi eq, %arg1, %c0_i32 : i32
    %1 = arith.extui %0 : i1 to i32
    %c0_i32_0 = arith.constant 0 : i32
    %2 = arith.cmpi ne, %1, %c0_i32_0 : i32
    scf.if %2 {
      %c0_8 = arith.constant 0 : index
      %c0_9 = arith.constant 0 : index
      %10 = vector.load %arg2[%c0_8, %c0_9] : memref<8x32xf32, #tpu.memory_space<vmem>>, vector<8x32xf32>
      %cst_10 = arith.constant dense<0.000000e+00> : vector<8xf32>
      %11 = vector.multi_reduction <add>, %10, %cst_10 [1] : vector<8x32xf32> to vector<8xf32>
      %12 = vector.shape_cast %11 : vector<8xf32> to vector<8x1xf32>
      %cst_11 = arith.constant 3.200000e+01 : f32
      %13 = vector.broadcast %cst_11 : f32 to vector<8x1xf32>
      %14 = arith.divf %12, %13 : vector<8x1xf32>
      %15 = vector.broadcast %14 : vector<8x1xf32> to vector<8x32xf32>
      %16 = arith.subf %10, %15 : vector<8x32xf32>
      %17 = arith.mulf %16, %16 : vector<8x32xf32>
      %cst_12 = arith.constant dense<0.000000e+00> : vector<8xf32>
      %18 = vector.multi_reduction <add>, %17, %cst_12 [1] : vector<8x32xf32> to vector<8xf32>
      %19 = vector.shape_cast %18 : vector<8xf32> to vector<8x1xf32>
      %cst_13 = arith.constant 3.200000e+01 : f32
      %20 = vector.broadcast %cst_13 : f32 to vector<8x1xf32>
      %21 = arith.divf %19, %20 : vector<8x1xf32>
      %cst_14 = arith.constant 9.99999974E-6 : f32
      %22 = vector.broadcast %cst_14 : f32 to vector<8x1xf32>
      %23 = arith.addf %21, %22 : vector<8x1xf32>
      %24 = math.rsqrt %23 : vector<8x1xf32>
      %c0_15 = arith.constant 0 : index
      %c0_16 = arith.constant 0 : index
      %25 = vector.load %arg3[%c0_15, %c0_16] : memref<1x32xf32, #tpu.memory_space<vmem>>, vector<1x32xf32>
      %c0_17 = arith.constant 0 : index
      %c0_18 = arith.constant 0 : index
      %26 = vector.load %arg4[%c0_17, %c0_18] : memref<1x32xf32, #tpu.memory_space<vmem>>, vector<1x32xf32>
      %27 = vector.broadcast %24 : vector<8x1xf32> to vector<8x32xf32>
      %28 = arith.mulf %16, %27 : vector<8x32xf32>
      %29 = vector.broadcast %25 : vector<1x32xf32> to vector<8x32xf32>
      %30 = arith.mulf %28, %29 : vector<8x32xf32>
      %31 = vector.broadcast %26 : vector<1x32xf32> to vector<8x32xf32>
      %32 = arith.addf %30, %31 : vector<8x32xf32>
      %c0_19 = arith.constant 0 : index
      %c0_20 = arith.constant 0 : index
      %33 = vector.load %arg8[%c0_19, %c0_20] : memref<8x32xf32, #tpu.memory_space<vmem>>, vector<8x32xf32>
      tpu.vector_store %arg8[%c0_19, %c0_20], %32 {strides = array<i32>} : memref<8x32xf32, #tpu.memory_space<vmem>>, vector<8x32xf32>,
    } else {
    }
    %c0 = arith.constant 0 : index
    %c0_1 = arith.constant 0 : index
    %3 = vector.load %arg8[%c0, %c0_1] : memref<8x32xf32, #tpu.memory_space<vmem>>, vector<8x32xf32>
    %c0_2 = arith.constant 0 : index
    %c0_3 = arith.constant 0 : index
    %4 = vector.load %arg5[%c0_2, %c0_3] : memref<32x128xf32, #tpu.memory_space<vmem>>, vector<32x128xf32>
    %cst = arith.constant dense<0.000000e+00> : vector<8x128xf32>
    %5 = tpu.matmul %3, %4, %cst {dimension_numbers = #tpu.dot_dimension_numbers<[1], [0], [0], [1], [0, 0, 1, 1], [], []>} : vector<8x32xf32>, vector<32x128xf32>, vector<8x128xf32> -> vector<8x128xf32>
    %c0_4 = arith.constant 0 : index
    %c0_5 = arith.constant 0 : index
    %6 = vector.load %arg6[%c0_4, %c0_5] : memref<1x128xf32, #tpu.memory_space<vmem>>, vector<1x128xf32>
    %7 = vector.broadcast %6 : vector<1x128xf32> to vector<8x128xf32>
    %8 = arith.addf %5, %7 : vector<8x128xf32>
    %c0_6 = arith.constant 0 : index
    %c0_7 = arith.constant 0 : index
    %9 = vector.load %arg7[%c0_6, %c0_7] : memref<8x128xf32, #tpu.memory_space<vmem>>, vector<8x128xf32>
    tpu.vector_store %arg7[%c0_6, %c0_7], %8 {strides = array<i32>} : memref<8x128xf32, #tpu.memory_space<vmem>>, vector<8x128xf32>,
    return
  }
  func.func @transform_0(%arg0: i32, %arg1: i32) -> (i32, i32) {
    %c0_i32 = arith.constant 0 : i32
    %c0_i32_0 = arith.constant 0 : i32
    return %arg0, %c0_i32 : i32, i32
  }
  func.func @transform_1(%arg0: i32, %arg1: i32) -> (i32, i32) {
    %c0_i32 = arith.constant 0 : i32
    %c0_i32_0 = arith.constant 0 : i32
    %c0_i32_1 = arith.constant 0 : i32
    return %c0_i32, %c0_i32_0 : i32, i32
  }
  func.func @transform_2(%arg0: i32, %arg1: i32) -> (i32, i32) {
    %c0_i32 = arith.constant 0 : i32
    %c0_i32_0 = arith.constant 0 : i32
    %c0_i32_1 = arith.constant 0 : i32
    return %c0_i32, %c0_i32_0 : i32, i32
  }
  func.func @transform_3(%arg0: i32, %arg1: i32) -> (i32, i32) {
    %c0_i32 = arith.constant 0 : i32
    %c0_i32_0 = arith.constant 0 : i32
    return %c0_i32, %arg1 : i32, i32
  }
  func.func @transform_4(%arg0: i32, %arg1: i32) -> (i32, i32) {
    %c0_i32 = arith.constant 0 : i32
    %c0_i32_0 = arith.constant 0 : i32
    return %c0_i32, %arg1 : i32, i32
  }
  func.func @transform_5(%arg0: i32, %arg1: i32) -> (i32, i32) {
    %c0_i32 = arith.constant 0 : i32
    return %arg0, %arg1 : i32, i32
  }
}

</mosaic_0001>

<bundles_post_ra>
// kernel: tpu_custom_call.1
= control target key start
LH: loop header
LB: loop body
LE: loop exit
PB: predicated region body
PF: predicated region fallthrough
CT: control target
= control target key end

     0   :  { %s1014_s0 = inlined_call_operand.hbm [shape: f32[16,32], index: 0, kind: input, shape index: {}]   ;;  %s1015_s1 = inlined_call_operand.vmem [shape: f32[1,32], index: 1, kind: input, shape index: {}]   ;;  %s1016_s2 = inlined_call_operand.vmem [shape: f32[1,32], index: 2, kind: input, shape index: {}]   ;;  %s1017_s3 = inlined_call_operand.hbm [shape: f32[32,128], index: 3, kind: input, shape index: {}]   ;;  %s1018_s4 = inlined_call_operand.vmem [shape: f32[1,128], index: 4, kind: input, shape index: {}]   ;;  %s1019_s5 = inlined_call_operand.hbm [shape: f32[16,128], index: 5, kind: output, shape index: {}]  }
   0x1   :  { %1022 = sst [smem:[#allocation13_spill]] %s1017_s3 }
   0x2   :  { %10 = vsyncpa [#allocation4], 0 }
   0x3   :  { %12 = vsyncpa [#allocation4 + $0x1], 0 }
   0x4   :  { %13 = vsyncpa [#allocation7], 0 }
   0x5   :  { %14 = vsyncpa [#allocation5], 0 }
   0x6   :  { %16 = vsyncpa [#allocation5 + $0x1], 0  ;;  %s824_s18 = smov 0   ;;  %s826_s19 = smov 0  }
   0x7   :  { %s828_s20 = smov 0   ;;  %s830_s21 = smov 0  }
   0x8   :  { %s832_s22 = smov 0   ;;  %s834_s23 = smov 0  }
   0x9 LB: > { %s532_s24 = sadd.s32 4294967295, %s785_s23   ;;  %s533_s25 = sadd.s32 4294967294, %s785_s23   ;;  %s785_s23 = sphi %s834_s23, %s22_s23   ;;  %s781_s22 = sphi %s832_s22, %s1042_s22   ;;  %s777_s21 = sphi %s830_s21, %s1041_s21   ;;  %s773_s20 = sphi %s828_s20, %s1040_s20   ;;  %s769_s19 = sphi %s826_s19, %s1039_s19   ;;  %s765_s18 = sphi %s824_s18, %s1038_s18  }
   0xa   : > { %p54_p0 = scmp.ne.s32.totalorder %s769_s19, %s765_s18  ;;  %p858_p1 = scmp.eq.s32.totalorder %s532_s24, 0 }
   0xb   : > { %p862_p2 = scmp.eq.s32.totalorder %s532_s24, 1  ;;  %p180_p3 = scmp.eq.s32.totalorder %s533_s25, 1 }
   0xc   : > { %p868_p4 = por %p858_p1, %p54_p0  ;;  %p534_p5 = scmp.ge.s32.totalorder %s785_s23, 1 }
   0xd   : > { %p873_p6 = por %p180_p3, %p54_p0  ;;  %p187_p7 = scmp.lt.s32.totalorder %s785_s23, 3 }
   0xe   : > { %s1025_s28 = scalar_select %p868_p4, 1, 0 }
   0xf   : > { %s1026_s29 = scalar_select %p873_p6, 1, 0 }
  0x10   : > { %p878_p8 = pnand %p534_p5, %p187_p7  ;;  %s787_s6 = smov [#allocation6]  }
  0x11   : > { %s207_s7 = sshll.u32 %s787_s6, 4  ;;  %s34_s9 = sadd.s32 1, %s781_s22  ;;  %s208_s7 = int_to_ptr.vmem [resolvable:$true] %s207_s7 }
  0x12   : > { %p576_p9 = pneg %p878_p8  ;;  %s658_s10 = scalar_lea.vmem %s208_s7, 512 }
  0x13   : > { %p659_p13 = scmp.ne.s32.totalorder %s208_s7, %s658_s10  ;;  %p666_p5 = scmp.lt.s32.totalorder %s208_s7, %s208_s7 }
  0x14   : > { %p887_p11 = pnand %p576_p9, %p858_p1  ;;  %p667_p7 = scmp.lt.s32.totalorder %s658_s10, %s658_s10 }
  0x16   : > { %p649_p12 = pneg %p887_p11  ;;  %p668_p6 = por %p667_p7, %p666_p5 }
  0x18   : > { %p661_p0 = pnand %p659_p13, %p649_p12 }
  0x1a   : > { %p662_p3 = pneg %p661_p0 }
  0x1c   : > { %p669_p4 = pnand %p668_p6, %p662_p3 }
  0x1e   : > { %672 = shalt.err (!%p669_p4)
}
  0x1f   : > { %s788_s11 = smov 128   ;;  %s789_s12 = smov 8  }
  0x20   : > { %s1029_s3 = sld [smem:[#allocation13_spill]]  ;;  %p36_p6 = scmp.ge.s32.totalorder %s34_s9, 2 }
  0x21   : > { %s41_s15 = sadd.s32 1, %s773_s20  ;;  %p48_p4 = scmp.ne.s32.totalorder %s773_s20, %s769_s19 }
  0x22   : > { %p49_p9 = scmp.eq.s32.totalorder %s785_s23, 0  ;;  %s1044_s9 = smov (%p36_p6, %s34_s9), 0 }
  0x23   : > { %1030 = sst [smem:[#allocation12_spill]] %s1044_s9  ;;  %p911_p13 = por %p862_p2, %p48_p4 }
  0x24   : > { %p905_p12 = por %p49_p9, %p48_p4  ;;  %s38_s24 = ssub.s32 %s781_s22, %s1044_s9 }
  0x25   : > { %p589_p0 = scmp.lt.s32.totalorder %s785_s23, 2  ;;  %s227_s25 = sand.u32 1, %s773_s20  }
  0x26   : > { %579 = dma.hbm_to_vmem [thread:$0]  (!%p887_p11), %s1029_s3, 512, %s208_s7, [#allocation7], %s788_s11, %s788_s11, %s789_s12  }
  0x27   : > { %p39_p11 = scmp.eq.s32.totalorder %s38_s24, 0  ;;  %s538_s6 = sshll.u32 %s227_s25, 3 }
  0x28   : > { %s539_s8 = sshll.u32 %s781_s22, 7  ;;  %s231_s13 = scalar_lea.vmem [#allocation3], %s538_s6 }
  0x29   : > { %s920_s7 = scalar_select %p39_p11, %s773_s20, %s41_s15  }
  0x2a   : > { %s236_s12 = scalar_lea.hbm %s1014_s0, %s539_s8  ;;  %s238_s14 = sshll.u32 %s231_s13, 4  ;;  %s239_s14 = int_to_ptr.vmem [resolvable:$true] %s238_s14 }
  0x2b   : > { %p928_p2 = pnand %p589_p0, %p905_p12  ;;  %s228_s3 = scalar_lea.sflag [#allocation4], %s227_s25 }
  0x2c   : > { %s686_s24 = scalar_lea.vmem %s239_s14, 128  ;;  %s790_s15 = smov [#allocation3]  }
  0x2d   : > { %p675_p3 = pneg %p928_p2  ;;  %p687_p5 = scmp.ne.s32.totalorder %s239_s14, %s686_s24 }
  0x2e   : > { %s691_s9 = sshll.u32 %s790_s15, 4  ;;  %s692_s9 = int_to_ptr.vmem [resolvable:$false] %s691_s9 }
  0x2f   : > { %p689_p7 = pnand %p687_p5, %p675_p3  ;;  %s693_s8 = scalar_lea.vmem %s692_s9, 256 }
  0x30   : > { %p694_p4 = scmp.lt.s32.totalorder %s239_s14, %s692_s9  ;;  %p695_p9 = scmp.lt.s32.totalorder %s693_s8, %s686_s24 }
  0x31   : > { %p690_p6 = pneg %p689_p7 }
  0x32   : > { %p696_p11 = por %p695_p9, %p694_p4 }
  0x34   : > { %p697_p10 = pnand %p696_p11, %p690_p6 }
  0x36   : > { %700 = shalt.err (!%p697_p10)
}
  0x37   : > { %583 = dma.hbm_to_vmem [thread:$0]  (!%p928_p2), %s236_s12, 128, %s239_s14, %s228_s3  }
  0x38   : > { %247 = sbr.rel (%p878_p8) target bundleno = 589 (0x24d), region = 40  ;;  %s939_s16 = sand.u32 (!%p878_p8), 1, %s769_s19  }
  0x39   : > { %s541_s25 = sshll.u32 (!%p878_p8), %s939_s16, 3  ;;  %s250_s6 = scalar_lea.sflag (!%p878_p8), [#allocation4], %s939_s16 }
  0x3a   : > { %s253_s9 = scalar_lea.vmem (!%p878_p8), [#allocation3], %s541_s25  ;;  %p1034_p12 = scmp.ne.s32.totalorder (!%p878_p8), %s1025_s28, 0 }
  0x3d   : > { %752 = dma.done.wait (%p1034_p12), %s250_s6, 128  }
  0x3e   : > { %754 = vsyncadd (%p1034_p12), %s250_s6, 4294967168 }
  0x3f   : > { %756 = dma.done.wait (%p858_p1), [#allocation7], 512  }
  0x40   : > { %758 = vsyncadd (%p858_p1), [#allocation7], 4294966784  ;;  %vm295_vm0 = vcmask 261120   ;;  %v294_v0 = vld [vmem:[%s253_s9] sm:$0xff]  ;;  %v791_v7 = vmov 0.0   ;;  %vm792_vm1 = vmmov 0  }
  0x41   : > { %v296_v1 = vsel %vm295_vm0, %v294_v0, 0.0  ;;  %557 = vmatprep.subr.mxu0 %v791_v7  ;;  %v331_v8 = vld [vmem:[#allocation6 + $0x18] sm:$0xff]  ;;  %v330_v9 = vld [vmem:[#allocation6 + $0x10] sm:$0xff]  ;;  %565 = vmatprep.mubr.msk.f32.mxu0 %vm792_vm1, %v791_v7  ;;  %v329_v10 = vld [vmem:[#allocation6 + $0x8] sm:$0xff]  ;;  %s549_s12 = sshll.u32 %s777_s21, 7  ;;  %s286_s13 = scalar_lea.vmem [#allocation8], %s541_s25 }
  0x42   : > { %297 = vadd.xlane.f32.xlu0 %v296_v1  ;;  %558 = vmatpush3.msra.mxu0 %v331_v8  ;;  %v328_v11 = vld [vmem:[#allocation6] sm:$0xff]  ;;  %v544_v16 = vld [vmem:[%s1015_s1] ss:$0 sm:$0xff]  ;;  %s429_s14 = sshll.u32 %s286_s13, 4  ;;  %s972_s15 = scalar_lea.hbm %s1019_s5, %s549_s12  ;;  %s430_s14 = int_to_ptr.vmem [resolvable:$true] %s429_s14 }
  0x43   : > { %559 = vmatprep.subr.mxu0 %v791_v7  ;;  %v545_v18 = vld [vmem:[%s1016_s2] ss:$0 sm:$0xff]  ;;  %s415_s8 = scalar_lea.sflag [#allocation5], %s939_s16  ;;  %s701_s6 = scalar_lea.vmem %s430_s14, 128 }
  0x44   : > { %560 = vmatpush3.msra.mxu0 %v330_v9  ;;  %v546_v22 = vld [vmem:[%s1018_s4] ss:$0 sm:$0xff]  ;;  %p702_p1 = scmp.ne.s32.totalorder %s430_s14, %s701_s6  ;;  %s793_s21 = smov [#allocation8]  }
  0x45   : > { %561 = vmatprep.subr.mxu0 %v791_v7  ;;  %s705_s9 = sshll.u32 %s793_s21, 4  ;;  %s706_s9 = int_to_ptr.vmem [resolvable:$false] %s705_s9 }
  0x46   : > { %562 = vmatpush3.msra.mxu0 %v329_v10  ;;  %p703_p8 = pnand %p702_p1, %p911_p13  ;;  %s707_s25 = scalar_lea.vmem %s706_s9, 256 }
  0x47   : > { %563 = vmatprep.subr.mxu0 %v791_v7  ;;  %p708_p0 = scmp.lt.s32.totalorder %s430_s14, %s706_s9  ;;  %p709_p2 = scmp.lt.s32.totalorder %s707_s25, %s701_s6 }
  0x48   : > { %564 = vmatpush3.msra.mxu0 %v328_v11  ;;  %p704_p10 = pneg %p703_p8 }
  0x49   : > { %p710_p3 = por %p709_p2, %p708_p0 }
  0x4b   : > { %p711_p5 = pnand %p710_p3, %p704_p10 }
  0xcb   : > { %v298_v2 = vpop.xlane.xlu0 %297 }
  0xcc   : > { %v300_v3 = vmul.f32 0.03125, %v298_v2 }
  0xce   : > { %v301_v4 = vsub.f32 %v294_v0, %v300_v3 }
  0xd0   : > { %v302_v5 = vmul.f32 %v301_v4, %v301_v4 }
  0xd2   : > { %v303_v6 = vsel %vm295_vm0, %v302_v5, 0.0 }
  0xd3   : > { %304 = vadd.xlane.f32.xlu0 %v303_v6 }
 0x15c   : > { %v305_v12 = vpop.xlane.xlu0 %304 }
 0x15d   : > { %v306_v13 = vmul.f32 0.03125, %v305_v12 }
 0x15f   : > { %v307_v14 = vadd.f32 1e-05, %v306_v13 }
 0x161   : > { %645 = vrsqrt.f32 %v307_v14 }
 0x16e   : > { %v646_v15 = vpop.eup %645 }
 0x16f   : > { %v311_v17 = vmul.f32 %v646_v15, %v301_v4 }
 0x171   : > { %v318_v19 = vmul.f32 %v544_v16, %v311_v17 }
 0x173   : > { %v325_v20 = vadd.f32 %v545_v18, %v318_v19 }
 0x175   : > { %326 = vst.msk [vmem:[#allocation2] sm:$0xff] %vm295_vm0, %v325_v20 }
 0x17c   : > { %v327_v21 = vld [vmem:[#allocation2] sm:$0xff] }
 0x17d   : > { %566 = vmatmul.mubr.msk.f32.vlgmr.msra.gmra.mxu0 %vm295_vm0, %v327_v21 }
 0x23d   : > { %v409_v23 = vpop.f32.mrf.mxu0 }
 0x23e   : > { %v410_v24 = vadd.f32 %v546_v22, %v409_v23 }
 0x23f   : > { %v567_v25 = vpop.f32.mrf.mxu0 }
 0x240   : > { %413 = vst [vmem:[%s286_s13] sm:$0xff] %v410_v24 }
 0x241   : > { %714 = shalt.err (!%p711_p5)
}
 0x242   : > { %s715_s3 = scalar_lea.hbm %s972_s15, 128  ;;  %s719_s28 = scalar_lea.hbm %s1019_s5, 256 }
 0x243   : > { %p716_p7 = scmp.ne.s32.totalorder %s972_s15, %s715_s3  ;;  %p720_p9 = scmp.lt.s32.totalorder %s972_s15, %s1019_s5 }
 0x244   : > { %p721_p11 = scmp.lt.s32.totalorder %s719_s28, %s715_s3 }
 0x245   : > { %p717_p6 = pnand %p716_p7, %p911_p13 }
 0x246   : > { %p722_p12 = por %p721_p11, %p720_p9 }
 0x247   : > { %p718_p4 = pneg %p717_p6 }
 0x249   : > { %p723_p1 = pnand %p722_p12, %p718_p4 }
 0x24b   : > { %726 = shalt.err (!%p723_p1)
}
 0x24c   : > { %574 = dma.vmem_to_hbm [thread:$0]  (%p911_p13), %s430_s14, 128, %s972_s15, %s415_s8  }
 0x24d PF: > { %s441_s11 = sand.u32 1, %s765_s18   ;;  %p1035_p8 = scmp.ne.s32.totalorder %s1026_s29, 0 }
 0x24e   : > { %p1036_p10 = scmp.ge.s32.totalorder %s785_s23, 2  ;;  %s442_s12 = scalar_lea.sflag [#allocation5], %s441_s11 }
 0x250   : > { %p585_p0 = pnand %p1036_p10, %p1035_p8 }
 0x252   : > { %p586_p2 = pneg %p585_p0 }
 0x254   : > { %760 = dma.done.wait (%p586_p2), %s442_s12, 128  }
 0x255   : > { %762 = vsyncadd (%p586_p2), %s442_s12, 4294967168  ;;  %s22_s23 = sadd.s32 1, %s785_s23   ;;  %s1037_s17 = sld [smem:[#allocation12_spill]] }
 0x256   : > { %p19_p3 = scmp.ge.s32.totalorder %s22_s23, 4   ;;  %s1038_s18 = smov %s769_s19 }
 0x257   : > { %s1039_s19 = smov %s773_s20  ;;  %s1040_s20 = smov %s920_s7 }
 0x258   : > { %s1041_s21 = smov %s781_s22  ;;  %21 = sbr.rel (!%p19_p3) target bundleno = 9 (0x9), region = 97 }
 0x25b   : > { %s1042_s22 = smov %s1037_s17 }
 0x25d   :  { %447 = vsyncpa [#allocation4], 1 }
 0x25e   :  { %449 = vsyncpa [#allocation4 + $0x1], 1 }
 0x25f   :  { %450 = vsyncpa [#allocation7], 1 }
 0x260   :  { %451 = vsyncpa [#allocation5], 1 }
 0x261   :  { %453 = vsyncpa [#allocation5 + $0x1], 1 }

</bundles_post_ra>
